<compile_context>
chip_gen: v5e
topology: v5e:2x2
jax: 0.10.0
libtpu: 0.0.40
codegen_flags: <defaults>
</compile_context>

<pallas_src>
import functools

import jax
import jax.numpy as jnp
from jax.experimental import pallas as pl
from jax.experimental.pallas import tpu as pltpu

KERNEL_SIZES = (3, 4, 5)
NEG_INF = -1e30  # additive mask for invalid window positions (safe vs. -inf)
LANE = 128


def _round_up(n, m):
    return (n + m - 1) // m * m


def text_cnn_kernel(x_ref, w_ref, aux_ref, fcw_ref, out_ref, *,
                    lout, kmax, hidden, nf_total, nclass_pad):
    # TODO(synk): dropout is identity (inference mode); a training-mode mask
    # would use pltpu.prng_seed / pltpu.prng_random_bits.
    x = x_ref[...]                                    # (bt, Lpad, H) f32
    bt = x.shape[0]

    # im2col over the longest kernel window (kmax).  Shorter-kernel weight
    # blocks were zero-padded on the host, so their extra taps contribute 0.
    cols = [x[:, j:j + lout, :] for j in range(kmax)]
    xw = jnp.concatenate(cols, axis=-1)               # (bt, lout, kmax*H)
    xw = xw.reshape(bt * lout, kmax * hidden)         # lout % 8 == 0 -> aligned

    # Single fused conv matmul for all three branches:
    # (bt*lout, kmax*H) @ (kmax*H, 3F).
    acc = jnp.dot(xw, w_ref[...], preferred_element_type=jnp.float32)
    acc = acc.reshape(bt, lout, nf_total)             # (bt, lout, 3F)

    aux = aux_ref[...]                                # (lout + 2, aux_w)
    time_mask = aux[0:lout, 0:nf_total]               # 0 valid / -1e30 invalid
    conv_bias = aux[lout:lout + 1, 0:nf_total]        # (1, 3F)
    fc_bias = aux[lout + 1:lout + 2, 0:nclass_pad]    # (1, Cpad)

    # Masked max-pool over time, then bias + ReLU hoisted past the pool.
    pooled = jnp.max(acc + time_mask[None, :, :], axis=1)   # (bt, 3F)
    feat = jnp.maximum(pooled + conv_bias, 0.0)              # ReLU

    # FC: (bt, 3F) @ (3F, Cpad); Cpad is a multiple of 128 -> unmasked store.
    logits = jnp.dot(feat, fcw_ref[...], preferred_element_type=jnp.float32)
    out_ref[...] = (logits + fc_bias).astype(out_ref.dtype)


def text_cnn_forward(x, conv_ws, conv_bs, fc_w, fc_b, *, block_b=256):
    B, L, H = x.shape
    kmax = max(KERNEL_SIZES)
    assert L >= kmax, "sequence must be at least as long as the widest kernel"
    num_filter = conv_ws[0].shape[1]
    nf_total = len(KERNEL_SIZES) * num_filter
    num_class = fc_w.shape[1]
    nclass_pad = _round_up(num_class, LANE)           # lane-dense output

    # Window count padded to a multiple of 8 (sublane alignment); x padded so
    # every kmax-length window is in-bounds (extra rows are zeros and either
    # hit zero weight rows or are masked out of the max-pool).
    lout = _round_up(L - min(KERNEL_SIZES) + 1, 8)
    l_pad = lout + kmax - 1

    bt = min(block_b, _round_up(B, 8))
    b_pad = _round_up(B, bt)
    x_pad = jnp.pad(x, ((0, b_pad - B), (0, l_pad - L), (0, 0)))

    # Fused conv weight slab: each (k*H, F) block zero-padded to (kmax*H, F)
    # and concatenated along the filter axis -> (kmax*H, 3F).
    w_fused = jnp.concatenate(
        [jnp.pad(w, ((0, (kmax - k) * H), (0, 0)))
         for k, w in zip(KERNEL_SIZES, conv_ws)], axis=1)

    # FC weight / bias padded along the class dim to a multiple of 128 lanes.
    fc_w_pad = jnp.pad(fc_w, ((0, 0), (0, nclass_pad - num_class)))
    fc_b_pad = jnp.pad(fc_b, ((0, 0), (0, nclass_pad - num_class)))

    # aux slab: rows [0, lout) = additive time mask per filter block,
    # row lout = conv biases, row lout+1 = (padded) fc bias.
    aux_w = max(nf_total, nclass_pad)
    t = jnp.arange(lout)[:, None]
    mask = jnp.concatenate(
        [jnp.broadcast_to(
            jnp.where(t < (L - k + 1), 0.0, NEG_INF).astype(jnp.float32),
            (lout, num_filter))
         for k in KERNEL_SIZES], axis=1)                      # (lout, 3F)
    conv_bias = jnp.concatenate(conv_bs, axis=1)              # (1, 3F)
    pad_w = lambda a: jnp.pad(a, ((0, 0), (0, aux_w - a.shape[1])))
    aux = jnp.concatenate(
        [pad_w(mask), pad_w(conv_bias), pad_w(fc_b_pad)],
        axis=0).astype(jnp.float32)

    kernel = functools.partial(
        text_cnn_kernel, lout=lout, kmax=kmax, hidden=H,
        nf_total=nf_total, nclass_pad=nclass_pad)

    out = pl.pallas_call(
        kernel,
        out_shape=jax.ShapeDtypeStruct((b_pad, nclass_pad), jnp.float32),
        grid=(b_pad // bt,),
        in_specs=[
            pl.BlockSpec((bt, l_pad, H), lambda b: (b, 0, 0)),        # x tile
            pl.BlockSpec((kmax * H, nf_total), lambda b: (0, 0)),     # fused W
            pl.BlockSpec((lout + 2, aux_w), lambda b: (0, 0)),        # mask+biases
            pl.BlockSpec((nf_total, nclass_pad), lambda b: (0, 0)),   # fc W (padded)
        ],
        out_specs=pl.BlockSpec((bt, nclass_pad), lambda b: (b, 0)),
        compiler_params=pltpu.CompilerParams(
            dimension_semantics=("parallel",),
            vmem_limit_bytes=48 * 1024 * 1024),
    )(x_pad, w_fused, aux, fc_w_pad)

    return out[:B, :num_class]


def text_cnn_reference(x, conv_ws, conv_bs, fc_w, fc_b):
    # Pure-JAX reference with the original (per-branch) math.
    B, L, H = x.shape
    pooled = []
    for k, w, b in zip(KERNEL_SIZES, conv_ws, conv_bs):
        nf = w.shape[1]
        lo = L - k + 1
        acc = jnp.zeros((B, lo, nf), jnp.float32)
        for j in range(k):
            acc = acc + jnp.einsum("blh,hf->blf",
                                   x[:, j:j + lo, :], w[j * H:(j + 1) * H, :])
        acc = jnp.maximum(acc + b[None, :, :], 0.0)
        pooled.append(jnp.max(acc, axis=1))
    feat = jnp.concatenate(pooled, axis=-1)
    return feat @ fc_w + fc_b


if __name__ == "__main__":
    # Small shapes consistent with the module's forward:
    #   sequence_encoder output: (batch=2, seq_len=16, hidden=32)
    #   num_filter=16, kernel_sizes=[3,4,5], num_class=4
    B, L, H = 2, 16, 32
    NUM_FILTER, NUM_CLASS = 16, 4

    key = jax.random.PRNGKey(0)
    ks = jax.random.split(key, 9)

    x = jax.random.normal(ks[0], (B, L, H), dtype=jnp.float32)

    conv_ws, conv_bs = [], []
    for i, k in enumerate(KERNEL_SIZES):
        bound = 1.0 / (H * k) ** 0.5
        # PyTorch Conv1d weight (F, H, k) rearranged to (k*H, F) (shift-major).
        w = jax.random.uniform(ks[1 + i], (k * H, NUM_FILTER),
                               minval=-bound, maxval=bound, dtype=jnp.float32)
        b = jax.random.uniform(ks[4 + i], (1, NUM_FILTER),
                               minval=-bound, maxval=bound, dtype=jnp.float32)
        conv_ws.append(w)
        conv_bs.append(b)

    fc_in = len(KERNEL_SIZES) * NUM_FILTER
    bound = 1.0 / fc_in ** 0.5
    fc_w = jax.random.uniform(ks[7], (fc_in, NUM_CLASS),
                              minval=-bound, maxval=bound, dtype=jnp.float32)
    fc_b = jax.random.uniform(ks[8], (1, NUM_CLASS),
                              minval=-bound, maxval=bound, dtype=jnp.float32)

    logits = text_cnn_forward(x, conv_ws, conv_bs, fc_w, fc_b)
    logits = jax.block_until_ready(logits)

    ref = text_cnn_reference(x, conv_ws, conv_bs, fc_w, fc_b)
    assert logits.shape == (B, NUM_CLASS)
    assert jnp.allclose(logits, ref, atol=1e-4, rtol=1e-4)

    print("KERNEL_OK")
</pallas_src>

<mosaic_0001>
module attributes {stable_mosaic.version = 11 : i64} {
  func.func @text_cnn_kernel(%arg0: i32, %arg1: memref<8x20x32xf32, #tpu.memory_space<vmem>>, %arg2: memref<160x48xf32, #tpu.memory_space<vmem>>, %arg3: memref<18x128xf32, #tpu.memory_space<vmem>>, %arg4: memref<48x128xf32, #tpu.memory_space<vmem>>, %arg5: memref<8x128xf32, #tpu.memory_space<vmem>>) attributes {dimension_semantics = [#tpu.dimension_semantics<parallel>], iteration_bounds = array<i64: 1>, scalar_prefetch = 0 : i64, scratch_operands = 0 : i64, tpu.core_type = #tpu.core_type<tc>, window_params = [{transform_indices = @transform_0, window_bounds = array<i64: 8, 20, 32>}, {pipeline_mode = #tpu.pipeline_mode<synchronous>, transform_indices = @transform_1, window_bounds = array<i64: 160, 48>}, {pipeline_mode = #tpu.pipeline_mode<synchronous>, transform_indices = @transform_2, window_bounds = array<i64: 18, 128>}, {pipeline_mode = #tpu.pipeline_mode<synchronous>, transform_indices = @transform_3, window_bounds = array<i64: 48, 128>}, {transform_indices = @transform_4, window_bounds = array<i64: 8, 128>}]} {
    %c0 = arith.constant 0 : index
    %c0_0 = arith.constant 0 : index
    %c0_1 = arith.constant 0 : index
    %0 = vector.load %arg1[%c0, %c0_0, %c0_1] : memref<8x20x32xf32, #tpu.memory_space<vmem>>, vector<8x20x32xf32>
    %1 = vector.extract_strided_slice %0 {offsets = [0, 0, 0], sizes = [8, 16, 32], strides = [1, 1, 1]} : vector<8x20x32xf32> to vector<8x16x32xf32>
    %2 = vector.extract_strided_slice %0 {offsets = [0, 1, 0], sizes = [8, 16, 32], strides = [1, 1, 1]} : vector<8x20x32xf32> to vector<8x16x32xf32>
    %3 = vector.extract_strided_slice %0 {offsets = [0, 2, 0], sizes = [8, 16, 32], strides = [1, 1, 1]} : vector<8x20x32xf32> to vector<8x16x32xf32>
    %4 = vector.extract_strided_slice %0 {offsets = [0, 3, 0], sizes = [8, 16, 32], strides = [1, 1, 1]} : vector<8x20x32xf32> to vector<8x16x32xf32>
    %5 = vector.extract_strided_slice %0 {offsets = [0, 4, 0], sizes = [8, 16, 32], strides = [1, 1, 1]} : vector<8x20x32xf32> to vector<8x16x32xf32>
    %6 = tpu.concatenate %1, %2, %3, %4, %5 in 2 : vector<8x16x32xf32>, vector<8x16x32xf32>, vector<8x16x32xf32>, vector<8x16x32xf32>, vector<8x16x32xf32> -> vector<8x16x160xf32>
    %7 = vector.shape_cast %6 : vector<8x16x160xf32> to vector<128x160xf32>
    %c0_2 = arith.constant 0 : index
    %c0_3 = arith.constant 0 : index
    %8 = vector.load %arg2[%c0_2, %c0_3] : memref<160x48xf32, #tpu.memory_space<vmem>>, vector<160x48xf32>
    %cst = arith.constant dense<0.000000e+00> : vector<128x48xf32>
    %9 = tpu.matmul %7, %8, %cst {dimension_numbers = #tpu.dot_dimension_numbers<[1], [0], [0], [1], [0, 0, 1, 1], [], []>} : vector<128x160xf32>, vector<160x48xf32>, vector<128x48xf32> -> vector<128x48xf32>
    %10 = vector.shape_cast %9 : vector<128x48xf32> to vector<8x16x48xf32>
    %c0_4 = arith.constant 0 : index
    %c0_5 = arith.constant 0 : index
    %11 = vector.load %arg3[%c0_4, %c0_5] : memref<18x128xf32, #tpu.memory_space<vmem>>, vector<18x128xf32>
    %12 = vector.extract_strided_slice %11 {offsets = [0, 0], sizes = [16, 48], strides = [1, 1]} : vector<18x128xf32> to vector<16x48xf32>
    %13 = vector.extract_strided_slice %11 {offsets = [16, 0], sizes = [1, 48], strides = [1, 1]} : vector<18x128xf32> to vector<1x48xf32>
    %14 = vector.extract_strided_slice %11 {offsets = [17, 0], sizes = [1, 128], strides = [1, 1]} : vector<18x128xf32> to vector<1x128xf32>
    %15 = vector.shape_cast %12 : vector<16x48xf32> to vector<1x16x48xf32>
    %16 = vector.broadcast %15 : vector<1x16x48xf32> to vector<8x16x48xf32>
    %17 = arith.addf %10, %16 : vector<8x16x48xf32>
    %cst_6 = arith.constant dense<0xFF800000> : vector<8x48xf32>
    %18 = vector.multi_reduction <maximumf>, %17, %cst_6 [1] : vector<8x16x48xf32> to vector<8x48xf32>
    %19 = vector.broadcast %13 : vector<1x48xf32> to vector<8x48xf32>
    %20 = arith.addf %18, %19 : vector<8x48xf32>
    %cst_7 = arith.constant 0.000000e+00 : f32
    %21 = vector.broadcast %cst_7 : f32 to vector<8x48xf32>
    %22 = arith.maximumf %20, %21 : vector<8x48xf32>
    %c0_8 = arith.constant 0 : index
    %c0_9 = arith.constant 0 : index
    %23 = vector.load %arg4[%c0_8, %c0_9] : memref<48x128xf32, #tpu.memory_space<vmem>>, vector<48x128xf32>
    %cst_10 = arith.constant dense<0.000000e+00> : vector<8x128xf32>
    %24 = tpu.matmul %22, %23, %cst_10 {dimension_numbers = #tpu.dot_dimension_numbers<[1], [0], [0], [1], [0, 0, 1, 1], [], []>} : vector<8x48xf32>, vector<48x128xf32>, vector<8x128xf32> -> vector<8x128xf32>
    %25 = vector.broadcast %14 : vector<1x128xf32> to vector<8x128xf32>
    %26 = arith.addf %24, %25 : vector<8x128xf32>
    %c0_11 = arith.constant 0 : index
    %c0_12 = arith.constant 0 : index
    %27 = vector.load %arg5[%c0_11, %c0_12] : memref<8x128xf32, #tpu.memory_space<vmem>>, vector<8x128xf32>
    tpu.vector_store %arg5[%c0_11, %c0_12], %26 {strides = array<i32>} : memref<8x128xf32, #tpu.memory_space<vmem>>, vector<8x128xf32>,
    return
  }
  func.func @transform_0(%arg0: i32) -> (i32, i32, i32) {
    %c0_i32 = arith.constant 0 : i32
    %c0_i32_0 = arith.constant 0 : i32
    %c0_i32_1 = arith.constant 0 : i32
    return %arg0, %c0_i32, %c0_i32_0 : i32, i32, i32
  }
  func.func @transform_1(%arg0: i32) -> (i32, i32) {
    %c0_i32 = arith.constant 0 : i32
    %c0_i32_0 = arith.constant 0 : i32
    %c0_i32_1 = arith.constant 0 : i32
    return %c0_i32, %c0_i32_0 : i32, i32
  }
  func.func @transform_2(%arg0: i32) -> (i32, i32) {
    %c0_i32 = arith.constant 0 : i32
    %c0_i32_0 = arith.constant 0 : i32
    %c0_i32_1 = arith.constant 0 : i32
    return %c0_i32, %c0_i32_0 : i32, i32
  }
  func.func @transform_3(%arg0: i32) -> (i32, i32) {
    %c0_i32 = arith.constant 0 : i32
    %c0_i32_0 = arith.constant 0 : i32
    %c0_i32_1 = arith.constant 0 : i32
    return %c0_i32, %c0_i32_0 : i32, i32
  }
  func.func @transform_4(%arg0: i32) -> (i32, i32) {
    %c0_i32 = arith.constant 0 : i32
    %c0_i32_0 = arith.constant 0 : i32
    return %arg0, %c0_i32 : i32, i32
  }
}

</mosaic_0001>

<bundles_post_ra>
// kernel: tpu_custom_call.1
= control target key start
LH: loop header
LB: loop body
LE: loop exit
PB: predicated region body
PF: predicated region fallthrough
CT: control target
= control target key end

     0   :  { %vm244_vm0 = vcmask 1044480   ;;  %vm66_vm1 = vcmask 1046528   ;;  %vm155_vm2 = vcmask 1045504   ;;  %s994_s29 = smov 96   ;;  %s1594_s0 = inlined_call_operand.vmem [shape: f32[8,20,32], index: 0, kind: input, shape index: {}]   ;;  %s1595_s1 = inlined_call_operand.vmem [shape: f32[160,48], index: 1, kind: input, shape index: {}]   ;;  %s1596_s2 = inlined_call_operand.vmem [shape: f32[18,128], index: 2, kind: input, shape index: {}]   ;;  %s1597_s3 = inlined_call_operand.vmem [shape: f32[48,128], index: 3, kind: input, shape index: {}]   ;;  %s1598_s4 = inlined_call_operand.hbm [shape: f32[8,128], index: 4, kind: output, shape index: {}]  }
   0x1   :  { %v1026_v0 = vld [vmem:[%s1594_s0 + $0x50] sm:$0xff]  ;;  %v1031_v1 = vld [vmem:[%s1594_s0 + $0x58] sm:$0xf]  ;;  %v1036_v2 = vld [vmem:[%s1594_s0 + $0x60] sm:$0xff] }
   0x2   :  { %v1041_v3 = vld [vmem:[%s1594_s0 + $0x68] sm:$0xff]  ;;  %v261_v4 = vrot.slane %v1026_v0, 3  ;;  %v263_v5 = vrot.slane %v1031_v1, 3  ;;  %v265_v6 = vrot.slane %v1036_v2, 3  ;;  %v83_v8 = vrot.slane %v1026_v0, 1  ;;  %v1053_v11 = vld [vmem:[%s1594_s0] sm:$0xff] }
   0x3   :  { %v266_v7 = vrot.slane %v1041_v3, 3  ;;  %v85_v9 = vrot.slane %v1031_v1, 1  ;;  %v87_v10 = vrot.slane %v1036_v2, 1  ;;  %v88_v13 = vrot.slane %v1041_v3, 1  ;;  %v1063_v15 = vld [vmem:[%s1594_s0 + $0x8] sm:$0xff]  ;;  %v1092_v29 = vld [vmem:[%s1594_s0 + $0x78] sm:$0xff] }
   0x4   :  { %v264_v12 = vsel %vm244_vm0, %v261_v4, %v263_v5  ;;  %v172_v14 = vrot.slane %v1026_v0, 2  ;;  %v1068_v16 = vld [vmem:[%s1594_s0 + $0x70] sm:$0xf]  ;;  %v174_v19 = vrot.slane %v1031_v1, 2  ;;  %v176_v20 = vrot.slane %v1036_v2, 2 }
   0x5   :  { %v267_v17 = vsel %vm244_vm0, %v265_v6, %v266_v7  ;;  %v86_v18 = vsel %vm66_vm1, %v83_v8, %v85_v9  ;;  %v89_v22 = vsel %vm66_vm1, %v87_v10, %v88_v13  ;;  %v177_v23 = vrot.slane %v1041_v3, 2  ;;  %v1087_v28 = vld [vmem:[%s1594_s0 + $0x10] sm:$0xf] }
   0x6   :  { %v858_v21 = vpack.i.bf16 %v264_v12, %v267_v17  ;;  %v67_v24 = vrot.slane %v1053_v11, 1  ;;  %v848_v25 = vpack.i.bf16 %v86_v18, %v89_v22  ;;  %v68_v26 = vrot.slane %v1063_v15, 1 }
   0x7   :  { %v90_v27 = vrot.slane %v1068_v16, 1 }
   0x8   :  { %859 = vrot.lane.b32.xlu1 %v858_v21, %s994_s29 }
   0x9   :  { %9 = vsyncpa [#allocation3], 0  ;;  %s995_s8 = smov 32   ;;  %v175_v30 = vsel %vm155_vm2, %v172_v14, %v174_v19  ;;  %v178_v31 = vsel %vm155_vm2, %v176_v20, %v177_v23  ;;  %v69_v32 = vsel %vm66_vm1, %v67_v24, %v68_v26  ;;  %v91_v33 = vsel %vm66_vm1, %v88_v13, %v90_v27  ;;  %v1104_v34 = vld [vmem:[%s1594_s0 + $0x80] sm:$0xff]  ;;  %s996_s11 = smov 64   ;;  %v1126_v53 = vld [vmem:[%s1594_s0 + $0x18] sm:$0xff] }
   0xa   :  { %849 = vrot.lane.b32.xlu0 %v848_v25, %s995_s8  ;;  %v70_v35 = vrot.slane %v1087_v28, 1  ;;  %v92_v36 = vrot.slane %v1092_v29, 1  ;;  %v853_v37 = vpack.i.bf16 %v175_v30, %v178_v31  ;;  %v863_v38 = vpack.i.bf16 %v69_v32, %v91_v33  ;;  %v1131_v54 = vld [vmem:[%s1594_s0 + $0x20] sm:$0xff]  ;;  %v1136_v55 = vld [vmem:[%s1594_s0 + $0x88] sm:$0xf]  ;;  %v1161_v18 = vld [vmem:[%s1594_s0 + $0x90] sm:$0xff] }
   0xb   :  { %v93_v39 = vrot.slane %v1104_v34, 1  ;;  %v157_v40 = vrot.slane %v1063_v15, 2  ;;  %v159_v41 = vrot.slane %v1087_v28, 2  ;;  %v181_v42 = vrot.slane %v1092_v29, 2  ;;  %v1155_v13 = vld [vmem:[%s1594_s0 + $0x28] sm:$0xf] }
   0xc   :  { %v182_v43 = vrot.slane %v1104_v34, 2  ;;  %v156_v44 = vrot.slane %v1053_v11, 2  ;;  %v179_v45 = vrot.slane %v1068_v16, 2  ;;  %v71_v47 = vsel %vm66_vm1, %v68_v26, %v70_v35 }
   0xd   :  { %v94_v49 = vsel %vm66_vm1, %v92_v36, %v93_v39  ;;  %v160_v50 = vsel %vm155_vm2, %v157_v40, %v159_v41  ;;  %v245_v56 = vrot.slane %v1053_v11, 3  ;;  %v246_v57 = vrot.slane %v1063_v15, 3  ;;  %v1190_v41 = vld [vmem:[%s1594_s0 + $0x30] sm:$0xff] }
   0xe   :  { %v158_v46 = vsel %vm155_vm2, %v156_v44, %v157_v40  ;;  %v180_v48 = vsel %vm155_vm2, %v177_v23, %v179_v45  ;;  %v183_v51 = vsel %vm155_vm2, %v181_v42, %v182_v43  ;;  %v268_v58 = vrot.slane %v1068_v16, 3  ;;  %v1195_v42 = vld [vmem:[%s1594_s0 + $0x38] sm:$0xff]  ;;  %v1201_v44 = vld [vmem:[%s1594_s0 + $0xa0] sm:$0xf] }
   0xf   :  { %v868_v52 = vpack.i.bf16 %v158_v46, %v180_v48  ;;  %v878_v59 = vpack.i.bf16 %v71_v47, %v94_v49  ;;  %v883_v60 = vpack.i.bf16 %v160_v50, %v183_v51  ;;  %v247_v61 = vsel %vm244_vm0, %v245_v56, %v246_v57  ;;  %v1211_v49 = vld [vmem:[%s1595_s1 + $0x98] sm:$0xff]  ;;  %v1216_v50 = vld [vmem:[%s1595_s1 + $0x90] sm:$0xff] }
  0x10   :  { %864 = vrot.lane.b32.xlu1 %v863_v38, %s995_s8  ;;  %v161_v62 = vrot.slane %v1126_v53, 2  ;;  %v162_v63 = vrot.slane %v1131_v54, 2  ;;  %v184_v5 = vrot.slane %v1136_v55, 2  ;;  %v269_v6 = vsel %vm244_vm0, %v266_v7, %v268_v58  ;;  %v1166_v7 = vld [vmem:[%s1594_s0 + $0x98] sm:$0xff]  ;;  %554 = vmatpush.msra.mxu1 %v1211_v49 }
  0x11   :  { %869 = vrot.lane.b32.xlu2 %v868_v52, %s996_s11  ;;  %v72_v9 = vrot.slane %v1126_v53, 1  ;;  %v73_v10 = vrot.slane %v1131_v54, 1  ;;  %v95_v12 = vrot.slane %v1136_v55, 1  ;;  %v873_v17 = vpack.i.bf16 %v247_v61, %v269_v6 }
  0x12   :  { %854 = vrot.lane.b32.xlu0 %v853_v37, %s996_s11  ;;  %v248_v19 = vrot.slane %v1087_v28, 3  ;;  %v270_v20 = vrot.slane %v1092_v29, 3  ;;  %v271_v21 = vrot.slane %v1104_v34, 3  ;;  %v163_v22 = vsel %vm155_vm2, %v161_v62, %v162_v63  ;;  %555 = vmatpush.msra.mxu1 %v1216_v50 }
  0x13   :  { %v185_v23 = vsel %vm155_vm2, %v182_v43, %v184_v5  ;;  %v74_v24 = vsel %vm66_vm1, %v72_v9, %v73_v10  ;;  %v96_v25 = vsel %vm66_vm1, %v93_v39, %v95_v12  ;;  %v164_v26 = vrot.slane %v1155_v13, 2  ;;  %v1236_v5 = vld [vmem:[%s1594_s0 + $0xb0] sm:$0xff] }
  0x14   :  { %v186_v27 = vrot.slane %v1161_v18, 2  ;;  %v187_v30 = vrot.slane %v1166_v7, 2  ;;  %v898_v31 = vpack.i.bf16 %v163_v22, %v185_v23  ;;  %v249_v32 = vsel %vm244_vm0, %v246_v57, %v248_v19  ;;  %v1250_v19 = vld [vmem:[%s1594_s0 + $0xb8] sm:$0xf] }
  0x15   :  { %v272_v33 = vsel %vm244_vm0, %v270_v20, %v271_v21  ;;  %v893_v35 = vpack.i.bf16 %v74_v24, %v96_v25  ;;  %v75_v36 = vrot.slane %v1155_v13, 1  ;;  %v97_v37 = vrot.slane %v1161_v18, 1  ;;  %v1255_v20 = vld [vmem:[%s1595_s1 + $0x80] sm:$0xff] }
  0x16   :  { %v98_v38 = vrot.slane %v1166_v7, 1  ;;  %v165_v39 = vsel %vm155_vm2, %v162_v63, %v164_v26  ;;  %v188_v40 = vsel %vm155_vm2, %v186_v27, %v187_v30  ;;  %v888_v43 = vpack.i.bf16 %v249_v32, %v272_v33 }
  0x17   :  { %v250_v45 = vrot.slane %v1126_v53, 3  ;;  %v251_v46 = vrot.slane %v1131_v54, 3  ;;  %v273_v47 = vrot.slane %v1136_v55, 3  ;;  %v76_v48 = vsel %vm66_vm1, %v73_v10, %v75_v36 }
  0x18   :  { %884 = vrot.lane.b32.xlu1 %v883_v60, %s996_s11  ;;  %v99_v51 = vsel %vm66_vm1, %v97_v37, %v98_v38  ;;  %v913_v52 = vpack.i.bf16 %v165_v39, %v188_v40  ;;  %v77_v56 = vrot.slane %v1190_v41, 1  ;;  %v78_v57 = vrot.slane %v1195_v42, 1  ;;  %v1292_v40 = vld [vmem:[%s1594_s0 + $0x40] sm:$0xf] }
  0x19   :  { %874 = vrot.lane.b32.xlu2 %v873_v17, %s994_s29  ;;  %v100_v58 = vrot.slane %v1201_v44, 1  ;;  %vm333_vm3 = vcmask 1043456   ;;  %v334_v60 = vrot.slane %v1053_v11, 4  ;;  %v335_v61 = vrot.slane %v1063_v15, 4  ;;  %v1245_v17 = vld [vmem:[%s1594_s0 + $0x48] sm:$0xff] }
  0x1a   :  { %879 = vrot.lane.b32.xlu0 %v878_v59, %s995_s8  ;;  %v1227_v59 = vld [vmem:[%s1595_s1 + $0x88] sm:$0xff]  ;;  %v166_v62 = vrot.slane %v1190_v41, 2  ;;  %v167_v63 = vrot.slane %v1195_v42, 2  ;;  %v252_v6 = vsel %vm244_vm0, %v250_v45, %v251_v46  ;;  %v274_v9 = vsel %vm244_vm0, %v271_v21, %v273_v47  ;;  %v440_v45 = vld [vmem:[%s1595_s1 + $0x78] sm:$0xff] }
  0x1b   :  { %v908_v10 = vpack.i.bf16 %v76_v48, %v99_v51  ;;  %v189_v12 = vrot.slane %v1201_v44, 2  ;;  %vm374_vm4 = vcmask 261120   ;;  %556 = vmatpush.msra.mxu1 %v1227_v59  ;;  %v336_v21 = vsel %vm333_vm3, %v334_v60, %v335_v61  ;;  %808 = vmatpush.msra.mxu2 %v440_v45  ;;  %v438_v60 = vld [vmem:[%s1595_s1 + $0x68] sm:$0xff] }
  0x1c   :  { %v281_v22 = vrot.slane %v1236_v5, 3  ;;  %v260_v23 = vrot.slane %v1245_v17, 3  ;;  %v283_v24 = vrot.slane %v1250_v19, 3  ;;  %v903_v25 = vpack.i.bf16 %v252_v6, %v274_v9  ;;  %809 = vmatpush.msra.mxu3 %v440_v45  ;;  %477 = vmatpush.msra.mxu0 %v440_v45 }
  0x1d   :  { %v253_v26 = vrot.slane %v1155_v13, 3  ;;  %v275_v27 = vrot.slane %v1161_v18, 3  ;;  %557 = vmatpush.msra.mxu1 %v1255_v20  ;;  %v190_v36 = vsel %vm155_vm2, %v187_v30, %v189_v12  ;;  %v101_v39 = vsel %vm66_vm1, %v98_v38, %v100_v58  ;;  %v1297_v30 = vld [vmem:[%s1594_s0 + $0xa8] sm:$0xff]  ;;  %v439_v38 = vld [vmem:[%s1595_s1 + $0x70] sm:$0xff] }
  0x1e   :  { %v1270_v32 = vsel %vm244_vm0, %v260_v23, %v261_v4  ;;  %v1275_v33 = vsel %vm244_vm0, %v281_v22, %v283_v24  ;;  %791 = vmatmul.msk.f32.vlgmr.msra.gmra.mxu1 %vm374_vm4, %v336_v21  ;;  %v79_v4 = vsel %vm66_vm1, %v77_v56, %v78_v57  ;;  %v191_v56 = vrot.slane %v1297_v30, 2  ;;  %810 = vmatpush.msra.mxu2 %v439_v38  ;;  %v437_v24 = vld [vmem:[%s1595_s1 + $0x60] sm:$0xff] }
  0x1f   :  { %v963_v37 = vpack.i.bf16 %v1270_v32, %v1275_v33  ;;  %v254_v48 = vsel %vm244_vm0, %v251_v46, %v253_v26  ;;  %v192_v58 = vrot.slane %v1236_v5, 2  ;;  %v102_v46 = vrot.slane %v1297_v30, 1  ;;  %811 = vmatpush.msra.mxu3 %v439_v38  ;;  %478 = vmatpush.msra.mxu0 %v439_v38  ;;  %v428_v33 = vld [vmem:[%s1595_s1 + $0x18] sm:$0xff] }
  0x20   :  { %899 = vrot.lane.b32.xlu1 %v898_v31, %s996_s11  ;;  %v276_v31 = vrot.slane %v1166_v7, 3  ;;  %v103_v6 = vrot.slane %v1236_v5, 1  ;;  %v255_v12 = vrot.slane %v1190_v41, 3  ;;  %v256_v21 = vrot.slane %v1195_v42, 3  ;;  %812 = vmatpush.msra.mxu2 %v438_v60 }
  0x21   :  { %889 = vrot.lane.b32.xlu2 %v888_v43, %s994_s29  ;;  %v337_v43 = vrot.slane %v1087_v28, 4  ;;  %v169_v28 = vrot.slane %v1292_v40, 2  ;;  %v278_v23 = vrot.slane %v1201_v44, 3  ;;  %813 = vmatpush.msra.mxu3 %v438_v60  ;;  %v171_v38 = vrot.slane %v1245_v17, 2 }
  0x22   :  { %894 = vrot.lane.b32.xlu0 %v893_v35, %s995_s8  ;;  %v168_v35 = vsel %vm155_vm2, %v166_v62, %v167_v63  ;;  %v277_v51 = vsel %vm244_vm0, %v275_v27, %v276_v31  ;;  %v80_v62 = vrot.slane %v1292_v40, 1  ;;  %v104_v27 = vsel %vm66_vm1, %v102_v46, %v103_v6  ;;  %479 = vmatpush.msra.mxu0 %v438_v60 }
  0x23   :  { %v928_v47 = vpack.i.bf16 %v168_v35, %v190_v36  ;;  %v338_v9 = vsel %vm333_vm3, %v335_v61, %v337_v43  ;;  %v170_v61 = vsel %vm155_vm2, %v167_v63, %v169_v28  ;;  %v339_v35 = vrot.slane %v1126_v53, 4  ;;  %v436_v63 = vld [vmem:[%s1595_s1 + $0x58] sm:$0xff]  ;;  %814 = vmatpush.msra.mxu2 %v437_v24  ;;  %815 = vmatpush.msra.mxu3 %v437_v24  ;;  %v435_v43 = vld [vmem:[%s1595_s1 + $0x50] sm:$0xff]  ;;  %v434_v28 = vld [vmem:[%s1595_s1 + $0x48] sm:$0xff] }
  0x24   :  { %v81_v26 = vsel %vm66_vm1, %v78_v57, %v80_v62  ;;  %v340_v36 = vrot.slane %v1131_v54, 4  ;;  %v279_v57 = vsel %vm244_vm0, %v276_v31, %v278_v23  ;;  %480 = vmatpush.msra.mxu0 %v437_v24  ;;  %v280_v60 = vrot.slane %v1297_v30, 3 }
  0x25   :  { %v938_v45 = vpack.i.bf16 %v81_v26, %v104_v27  ;;  %816 = vmatpush.msra.mxu2 %v436_v63  ;;  %817 = vmatpush.msra.mxu3 %v436_v63  ;;  %v173_v62 = vsel %vm155_vm2, %v171_v38, %v172_v14  ;;  %v342_v23 = vrot.slane %v1155_v13, 4  ;;  %v432_v14 = vld [vmem:[%s1595_s1 + $0x38] sm:$0xff]  ;;  %v347_v27 = vrot.slane %v1292_v40, 4 }
  0x26   :  { %792 = vmatmul.msk.f32.gmra.mxu1 %vm374_vm4, %v338_v9  ;;  %481 = vmatpush.msra.mxu0 %v436_v63  ;;  %v433_v9 = vld [vmem:[%s1595_s1 + $0x40] sm:$0xff]  ;;  %v350_v63 = vrot.slane %v1026_v0, 4  ;;  %v355_v38 = vrot.slane %v1041_v3, 4  ;;  %vm391_vm5 = vcmask 523264   ;;  %vm408_vm6 = vcmask 785408  }
  0x27   :  { %818 = vmatpush.msra.mxu2 %v435_v43  ;;  %819 = vmatpush.msra.mxu3 %v435_v43  ;;  %v343_v13 = vsel %vm333_vm3, %v340_v36, %v342_v23  ;;  %vm626_vm7 = vcmask 392192   ;;  %vm732_vm8 = vcmask 1041409   ;;  %vm735_vm9 = vcmask 1042434  }
  0x28   :  { %914 = vrot.lane.b32.xlu1 %v913_v52, %s996_s11  ;;  %v923_v52 = vpack.i.bf16 %v79_v4, %v101_v39  ;;  %v257_v39 = vsel %vm244_vm0, %v255_v12, %v256_v21  ;;  %482 = vmatpush.msra.mxu0 %v435_v43  ;;  %v425_v43 = vld [vmem:[%s1595_s1] sm:$0xff]  ;;  %vm738_vm10 = vcmask 1043459   ;;  %vm741_vm11 = vcmask 1044484  }
  0x29   :  { %904 = vrot.lane.b32.xlu2 %v903_v25, %s994_s29  ;;  %v193_v25 = vsel %vm155_vm2, %v191_v56, %v192_v58  ;;  %v933_v31 = vpack.i.bf16 %v257_v39, %v279_v57  ;;  %v258_v56 = vrot.slane %v1292_v40, 3  ;;  %820 = vmatpush.msra.mxu2 %v434_v28  ;;  %v429_v40 = vld [vmem:[%s1595_s1 + $0x20] sm:$0xff]  ;;  %v352_v39 = vrot.slane %v1031_v1, 4  ;;  %v426_v57 = vld [vmem:[%s1595_s1 + $0x8] sm:$0xff] }
  0x2a   :  { %909 = vrot.lane.b32.xlu0 %v908_v10, %s995_s8  ;;  %v918_v10 = vpack.i.bf16 %v254_v48, %v277_v51  ;;  %v943_v4 = vpack.i.bf16 %v170_v61, %v193_v25  ;;  %v82_v48 = vrot.slane %v1245_v17, 1  ;;  %v105_v51 = vrot.slane %v1250_v19, 1  ;;  %821 = vmatpush.msra.mxu3 %v434_v28  ;;  %v431_v25 = vld [vmem:[%s1595_s1 + $0x30] sm:$0xff] }
  0x2b   :  { %v259_v24 = vsel %vm244_vm0, %v256_v21, %v258_v56  ;;  %483 = vmatpush.msra.mxu0 %v434_v28  ;;  %822 = vmatpush.msra.mxu2 %v433_v9  ;;  %v345_v21 = vrot.slane %v1195_v42, 4  ;;  %v354_v1 = vrot.slane %v1036_v2, 4  ;;  %vm744_vm12 = vcmask 1045509  }
  0x2c   :  { %v106_v12 = vsel %vm66_vm1, %v103_v6, %v105_v51  ;;  %823 = vmatpush.msra.mxu3 %v433_v9  ;;  %v357_v51 = vrot.slane %v1068_v16, 4  ;;  %vm747_vm13 = vcmask 1046534   ;;  %vm750_vm14 = vcmask 1047559  }
  0x2d   :  { %484 = vmatpush.msra.mxu0 %v433_v9  ;;  %824 = vmatpush.msra.mxu2 %v432_v14 }
  0x2e   :  { %825 = vmatpush.msra.mxu3 %v432_v14 }
  0x2f   :  { %485 = vmatpush.msra.mxu0 %v432_v14  ;;  %826 = vmatpush.msra.mxu2 %v431_v25 }
  0x30   :  { %929 = vrot.lane.b32.xlu1 %v928_v47, %s996_s11  ;;  %v194_v47 = vrot.slane %v1250_v19, 2  ;;  %827 = vmatpush.msra.mxu3 %v431_v25 }
  0x31   :  { %919 = vrot.lane.b32.xlu2 %v918_v10, %s994_s29  ;;  %v84_v10 = vsel %vm66_vm1, %v82_v48, %v83_v8  ;;  %v282_v8 = vsel %vm244_vm0, %v280_v60, %v281_v22  ;;  %v344_v22 = vrot.slane %v1190_v41, 4  ;;  %486 = vmatpush.msra.mxu0 %v431_v25  ;;  %v356_v48 = vsel %vm333_vm3, %v354_v1, %v355_v38 }
  0x32   :  { %924 = vrot.lane.b32.xlu0 %v923_v52, %s995_s8  ;;  %v341_v52 = vsel %vm333_vm3, %v339_v35, %v340_v36  ;;  %v195_v46 = vsel %vm155_vm2, %v192_v58, %v194_v47  ;;  %v953_v6 = vpack.i.bf16 %v84_v10, %v106_v12  ;;  %v948_v61 = vpack.i.bf16 %v259_v24, %v282_v8 }
  0x33   :  { %793 = vmatmul.msk.f32.gmra.mxu1 %vm374_vm4, %v341_v52  ;;  %v958_v58 = vpack.i.bf16 %v173_v62, %v195_v46  ;;  %v346_v26 = vsel %vm333_vm3, %v344_v22, %v345_v21  ;;  %v348_v35 = vsel %vm333_vm3, %v345_v21, %v347_v27  ;;  %v349_v36 = vrot.slane %v1245_v17, 4 }
  0x34   :  { %v360_v27 = vrot.slane %v1104_v34, 4 }
  0x35   :  { %v351_v32 = vsel %vm333_vm3, %v349_v36, %v350_v63 }
  0x38   :  { %944 = vrot.lane.b32.xlu1 %v943_v4, %s996_s11  ;;  %v430_v4 = vld [vmem:[%s1595_s1 + $0x28] sm:$0xff] }
  0x39   :  { %934 = vrot.lane.b32.xlu2 %v933_v31, %s994_s29  ;;  %828 = vmatpush.msra.mxu2 %v430_v4 }
  0x3a   :  { %939 = vrot.lane.b32.xlu0 %v938_v45, %s995_s8  ;;  %829 = vmatpush.msra.mxu3 %v430_v4  ;;  %v353_v45 = vsel %vm333_vm3, %v350_v63, %v352_v39 }
  0x3b   :  { %794 = vmatmul.msk.f32.gmra.mxu1 %vm374_vm4, %v343_v13  ;;  %487 = vmatpush.msra.mxu0 %v430_v4 }
  0x3c   :  { %830 = vmatpush.msra.mxu2 %v429_v40  ;;  %831 = vmatpush.msra.mxu3 %v429_v40 }
  0x3d   :  { %488 = vmatpush.msra.mxu0 %v429_v40 }
  0x3e   :  { %832 = vmatpush.msra.mxu2 %v428_v33  ;;  %833 = vmatpush.msra.mxu3 %v428_v33 }
  0x3f   :  { %489 = vmatpush.msra.mxu0 %v428_v33 }
  0x40   :  { %959 = vrot.lane.b32.xlu1 %v958_v58, %s996_s11 }
  0x41   :  { %949 = vrot.lane.b32.xlu2 %v948_v61, %s994_s29 }
  0x42   :  { %954 = vrot.lane.b32.xlu0 %v953_v6, %s995_s8 }
  0x43   :  { %795 = vmatmul.msk.f32.gmra.mxu1 %vm374_vm4, %v346_v26 }
  0x49   :  { %964 = vrot.lane.b32.xlu2 %v963_v37, %s994_s29  ;;  %v427_v37 = vld [vmem:[%s1595_s1 + $0x10] sm:$0xff]  ;;  %s782_s29 = sshll.u32 %s1598_s4, 4  ;;  %s783_s29 = int_to_ptr.hbm [resolvable:$true] %s782_s29 }
  0x4a   :  { %834 = vmatpush.msra.mxu2 %v427_v37  ;;  %835 = vmatpush.msra.mxu3 %v427_v37 }
  0x4b   :  { %796 = vmatmul.msk.f32.gmra.mxu1 %vm374_vm4, %v348_v35  ;;  %490 = vmatpush.msra.mxu0 %v427_v37 }
  0x4c   :  { %836 = vmatpush.msra.mxu2 %v426_v57  ;;  %837 = vmatpush.msra.mxu3 %v426_v57 }
  0x4d   :  { %491 = vmatpush.msra.mxu0 %v426_v57 }
  0x4e   :  { %838 = vmatpush.msra.mxu2 %v425_v43  ;;  %839 = vmatpush.msra.mxu3 %v425_v43 }
  0x4f   :  { %492 = vmatpush.msra.mxu0 %v425_v43 }
  0x50   :  { %840 = vmatpush.msrb.mxu2 %v1211_v49  ;;  %v358_v49 = vsel %vm333_vm3, %v355_v38, %v357_v51 }
  0x52   :  { %841 = vmatpush.msrb.mxu2 %v1216_v50 }
  0x53   :  { %797 = vmatmul.msk.f32.gmra.mxu1 %vm374_vm4, %v351_v32 }
  0x54   :  { %842 = vmatpush.msrb.mxu2 %v1227_v59 }
  0x56   :  { %843 = vmatpush.msrb.mxu2 %v1255_v20 }
  0x5b   :  { %798 = vmatmul.msk.f32.gmra.mxu1 %vm374_vm4, %v353_v45 }
  0x63   :  { %799 = vmatmul.msk.f32.gmra.mxu1 %vm374_vm4, %v356_v48  ;;  %v362_v48 = vrot.slane %v1136_v55, 4 }
  0x6b   :  { %v870_v47 = vpop.permute.xlu2 %869  ;;  %800 = vmatmul.msk.f32.gmra.mxu1 %vm374_vm4, %v358_v49 }
  0x6c   :  { %v872_v59 = vunpack.i.h.bf16 %v870_v47  ;;  %v871_v26 = vunpack.i.l.bf16 %v870_v47 }
  0x73   :  { %v875_v52 = vpop.permute.xlu2 %874 }
  0x74   :  { %v877_v10 = vunpack.i.h.bf16 %v875_v52  ;;  %v876_v36 = vunpack.i.l.bf16 %v875_v52 }
  0x7a   :  { %v860_v50 = vpop.permute.xlu1 %859 }
  0x7b   :  { %v890_v28 = vpop.permute.xlu2 %889  ;;  %v862_v20 = vunpack.i.h.bf16 %v860_v50  ;;  %v861_v12 = vunpack.i.l.bf16 %v860_v50 }
  0x7c   :  { %v850_v31 = vpop.permute.xlu0 %849  ;;  %v892_v33 = vunpack.i.h.bf16 %v890_v28  ;;  %v891_v47 = vunpack.i.l.bf16 %v890_v28 }
  0x7d   :  { %v852_v56 = vunpack.i.h.bf16 %v850_v31  ;;  %v851_v60 = vunpack.i.l.bf16 %v850_v31 }
  0x7f   :  { %v382_v58 = vsel %vm374_vm4, %v1026_v0, %v852_v56  ;;  %v383_v24 = vsel %vm374_vm4, %v1036_v2, %v851_v60 }
  0x82   :  { %v865_v62 = vpop.permute.xlu1 %864 }
  0x83   :  { %v867_v9 = vunpack.i.h.bf16 %v865_v62  ;;  %v866_v14 = vunpack.i.l.bf16 %v865_v62  ;;  %v905_v2 = vpop.permute.xlu2 %904 }
  0x84   :  { %v855_v46 = vpop.permute.xlu0 %854  ;;  %v907_v60 = vunpack.i.h.bf16 %v905_v2 }
  0x85   :  { %v857_v16 = vunpack.i.h.bf16 %v855_v46  ;;  %v856_v23 = vunpack.i.l.bf16 %v855_v46  ;;  %v375_v8 = vsel %vm374_vm4, %v1053_v11, %v867_v9  ;;  %v384_v0 = vsel %vm374_vm4, %v1041_v3, %v866_v14 }
  0x86   :  { %v392_v61 = vsel %vm391_vm5, %v375_v8, %v872_v59  ;;  %v359_v11 = vrot.slane %v1092_v29, 4  ;;  %v401_v37 = vsel %vm391_vm5, %v384_v0, %v871_v26  ;;  %v363_v59 = vsel %vm333_vm3, %v360_v27, %v362_v48 }
  0x87   :  { %v399_v6 = vsel %vm391_vm5, %v382_v58, %v857_v16  ;;  %v400_v13 = vsel %vm391_vm5, %v383_v24, %v856_v23  ;;  %v409_v21 = vsel %vm408_vm6, %v392_v61, %v877_v10  ;;  %v418_v43 = vsel %vm408_vm6, %v401_v37, %v876_v36 }
  0x88   :  { %v416_v25 = vsel %vm408_vm6, %v399_v6, %v862_v20  ;;  %v417_v22 = vsel %vm408_vm6, %v400_v13, %v861_v12  ;;  %493 = vmatmul.f32.vlgmr.msra.gmra.mxu0 %v409_v21  ;;  %v361_v39 = vsel %vm333_vm3, %v359_v11, %v360_v27  ;;  %v906_v10 = vunpack.i.l.bf16 %v905_v2 }
  0x89   :  { %514 = vmatmul.f32.vlgmr.msra.gmra.mxu2 %v416_v25  ;;  %517 = vmatmul.f32.vlgmr.msra.gmra.mxu3 %v417_v22  ;;  %v364_v20 = vrot.slane %v1161_v18, 4  ;;  %v365_v12 = vrot.slane %v1166_v7, 4  ;;  %v367_v2 = vrot.slane %v1201_v44, 4 }
  0x8a   :  { %v885_v35 = vpop.permute.xlu1 %884 }
  0x8b   :  { %v887_v4 = vunpack.i.h.bf16 %v885_v35  ;;  %v886_v57 = vunpack.i.l.bf16 %v885_v35  ;;  %v920_v50 = vpop.permute.xlu2 %919  ;;  %v366_v13 = vsel %vm333_vm3, %v364_v20, %v365_v12 }
  0x8c   :  { %v880_v63 = vpop.permute.xlu0 %879  ;;  %v922_v8 = vunpack.i.h.bf16 %v920_v50  ;;  %v921_v0 = vunpack.i.l.bf16 %v920_v50 }
  0x8d   :  { %v882_v40 = vunpack.i.h.bf16 %v880_v63  ;;  %v881_v32 = vunpack.i.l.bf16 %v880_v63 }
  0x8f   :  { %v376_v3 = vsel %vm374_vm4, %v1063_v15, %v882_v40  ;;  %v385_v1 = vsel %vm374_vm4, %v1092_v29, %v881_v32 }
  0x90   :  { %v393_v45 = vsel %vm391_vm5, %v376_v3, %v887_v4  ;;  %v402_v52 = vsel %vm391_vm5, %v385_v1, %v886_v57 }
  0x91   :  { %520 = vmatmul.f32.gmra.mxu3 %v418_v43  ;;  %v410_v38 = vsel %vm408_vm6, %v393_v45, %v892_v33  ;;  %801 = vmatmul.msk.f32.vlgmr.msrb.gmra.mxu2 %vm374_vm4, %v361_v39  ;;  %v419_v29 = vsel %vm408_vm6, %v402_v52, %v891_v47  ;;  %v369_v43 = vrot.slane %v1297_v30, 4  ;;  %v370_v45 = vrot.slane %v1236_v5, 4 }
  0x92   :  { %496 = vmatmul.f32.gmra.mxu0 %v410_v38  ;;  %v900_v51 = vpop.permute.xlu1 %899 }
  0x93   :  { %v902_v49 = vunpack.i.h.bf16 %v900_v51  ;;  %v901_v62 = vunpack.i.l.bf16 %v900_v51  ;;  %v935_v6 = vpop.permute.xlu2 %934 }
  0x94   :  { %v895_v15 = vpop.permute.xlu0 %894  ;;  %v937_v4 = vunpack.i.h.bf16 %v935_v6  ;;  %v936_v3 = vunpack.i.l.bf16 %v935_v6 }
  0x95   :  { %v897_v31 = vunpack.i.h.bf16 %v895_v15  ;;  %v896_v56 = vunpack.i.l.bf16 %v895_v15  ;;  %v371_v15 = vsel %vm333_vm3, %v369_v43, %v370_v45 }
  0x97   :  { %v377_v28 = vsel %vm374_vm4, %v1126_v53, %v897_v31  ;;  %v386_v55 = vsel %vm374_vm4, %v1104_v34, %v896_v56 }
  0x98   :  { %v394_v46 = vsel %vm391_vm5, %v377_v28, %v902_v49  ;;  %v403_v23 = vsel %vm391_vm5, %v386_v55, %v901_v62  ;;  %v372_v62 = vrot.slane %v1250_v19, 4 }
  0x99   :  { %523 = vmatmul.f32.gmra.mxu3 %v419_v29  ;;  %v411_v9 = vsel %vm408_vm6, %v394_v46, %v907_v60  ;;  %802 = vmatmul.msk.f32.gmra.mxu2 %vm374_vm4, %v363_v59  ;;  %v420_v34 = vsel %vm408_vm6, %v403_v23, %v906_v10 }
  0x9a   :  { %499 = vmatmul.f32.gmra.mxu0 %v411_v9  ;;  %v915_v16 = vpop.permute.xlu1 %914 }
  0x9b   :  { %v917_v14 = vunpack.i.h.bf16 %v915_v16  ;;  %v916_v61 = vunpack.i.l.bf16 %v915_v16  ;;  %v950_v39 = vpop.permute.xlu2 %949 }
  0x9c   :  { %v910_v53 = vpop.permute.xlu0 %909  ;;  %v952_v52 = vunpack.i.h.bf16 %v950_v39  ;;  %v951_v29 = vunpack.i.l.bf16 %v950_v39 }
  0x9d   :  { %v912_v58 = vunpack.i.h.bf16 %v910_v53  ;;  %v911_v24 = vunpack.i.l.bf16 %v910_v53 }
  0x9f   :  { %v378_v25 = vsel %vm374_vm4, %v1131_v54, %v912_v58  ;;  %v387_v21 = vsel %vm374_vm4, %v1161_v18, %v911_v24  ;;  %v368_v18 = vsel %vm333_vm3, %v365_v12, %v367_v2  ;;  %v373_v12 = vsel %vm333_vm3, %v370_v45, %v372_v62 }
  0xa0   :  { %v395_v22 = vsel %vm391_vm5, %v378_v25, %v917_v14  ;;  %v404_v27 = vsel %vm391_vm5, %v387_v21, %v916_v61 }
  0xa1   :  { %526 = vmatmul.f32.gmra.mxu3 %v420_v34  ;;  %v412_v26 = vsel %vm408_vm6, %v395_v22, %v922_v8  ;;  %803 = vmatmul.msk.f32.gmra.mxu2 %vm374_vm4, %v366_v13  ;;  %v421_v40 = vsel %vm408_vm6, %v404_v27, %v921_v0  ;;  %v559_v34 = vpop.f32.mrf.mxu1 }
  0xa2   :  { %502 = vmatmul.f32.gmra.mxu0 %v412_v26  ;;  %v930_v11 = vpop.permute.xlu1 %929 }
  0xa3   :  { %v932_v36 = vunpack.i.h.bf16 %v930_v11  ;;  %v931_v32 = vunpack.i.l.bf16 %v930_v11  ;;  %v965_v59 = vpop.permute.xlu2 %964 }
  0xa4   :  { %v925_v35 = vpop.permute.xlu0 %924  ;;  %v967_v20 = vunpack.i.h.bf16 %v965_v59  ;;  %v966_v58 = vunpack.i.l.bf16 %v965_v59 }
  0xa5   :  { %v927_v54 = vunpack.i.h.bf16 %v925_v35  ;;  %v926_v63 = vunpack.i.l.bf16 %v925_v35 }
  0xa7   :  { %v379_v33 = vsel %vm374_vm4, %v1190_v41, %v927_v54  ;;  %v388_v44 = vsel %vm374_vm4, %v1166_v7, %v926_v63 }
  0xa8   :  { %v396_v37 = vsel %vm391_vm5, %v379_v33, %v932_v36  ;;  %v405_v41 = vsel %vm391_vm5, %v388_v44, %v931_v32  ;;  %v1525_v32 = vld [vmem:[%s1596_s2 + $0x8] sm:$0xff]  ;;  %v1531_v44 = vld [vmem:[%s1596_s2] sm:$0xff] }
  0xa9   :  { %529 = vmatmul.f32.gmra.mxu3 %v421_v40  ;;  %v413_v57 = vsel %vm408_vm6, %v396_v37, %v937_v4  ;;  %804 = vmatmul.msk.f32.gmra.mxu2 %vm374_vm4, %v368_v18  ;;  %v422_v7 = vsel %vm408_vm6, %v405_v41, %v936_v3  ;;  %v562_v6 = vpop.f32.mrf.mxu1 }
  0xaa   :  { %505 = vmatmul.f32.gmra.mxu0 %v413_v57  ;;  %v945_v1 = vpop.permute.xlu1 %944 }
  0xab   :  { %v947_v47 = vunpack.i.h.bf16 %v945_v1  ;;  %v946_v49 = vunpack.i.l.bf16 %v945_v1 }
  0xac   :  { %v940_v38 = vpop.permute.xlu0 %939 }
  0xad   :  { %v942_v48 = vunpack.i.h.bf16 %v940_v38  ;;  %v941_v51 = vunpack.i.l.bf16 %v940_v38 }
  0xaf   :  { %v380_v50 = vsel %vm374_vm4, %v1195_v42, %v942_v48  ;;  %v389_v56 = vsel %vm374_vm4, %v1297_v30, %v941_v51  ;;  %v721_v48 = vld [vmem:[%s1597_s3 + $0x28] sm:$0xff] }
  0xb0   :  { %v397_v31 = vsel %vm391_vm5, %v380_v50, %v947_v47  ;;  %v406_v46 = vsel %vm391_vm5, %v389_v56, %v946_v49  ;;  %764 = vmatpush.msra.mxu2 %v721_v48 }
  0xb1   :  { %532 = vmatmul.f32.gmra.mxu3 %v422_v7  ;;  %v414_v60 = vsel %vm408_vm6, %v397_v31, %v952_v52  ;;  %805 = vmatmul.msk.f32.gmra.mxu2 %vm374_vm4, %v371_v15  ;;  %v423_v30 = vsel %vm408_vm6, %v406_v46, %v951_v29 }
  0xb2   :  { %508 = vmatmul.f32.gmra.mxu0 %v414_v60  ;;  %v960_v28 = vpop.permute.xlu1 %959 }
  0xb3   :  { %v962_v42 = vunpack.i.h.bf16 %v960_v28  ;;  %v961_v16 = vunpack.i.l.bf16 %v960_v28 }
  0xb4   :  { %v955_v55 = vpop.permute.xlu0 %954 }
  0xb5   :  { %v957_v9 = vunpack.i.h.bf16 %v955_v55  ;;  %v956_v10 = vunpack.i.l.bf16 %v955_v55 }
  0xb7   :  { %v381_v23 = vsel %vm374_vm4, %v1245_v17, %v957_v9  ;;  %v390_v19 = vsel %vm374_vm4, %v1236_v5, %v956_v10  ;;  %v565_v17 = vpop.f32.mrf.mxu1 }
  0xb8   :  { %v398_v53 = vsel %vm391_vm5, %v381_v23, %v962_v42  ;;  %v407_v24 = vsel %vm391_vm5, %v390_v19, %v961_v16 }
  0xb9   :  { %535 = vmatmul.f32.gmra.mxu3 %v423_v30  ;;  %v415_v14 = vsel %vm408_vm6, %v398_v53, %v967_v20  ;;  %806 = vmatmul.msk.f32.gmra.mxu2 %vm374_vm4, %v373_v12  ;;  %v424_v8 = vsel %vm408_vm6, %v407_v24, %v966_v58  ;;  %v720_v30 = vld [vmem:[%s1597_s3 + $0x20] sm:$0xff]  ;;  %v719_v12 = vld [vmem:[%s1597_s3 + $0x18] sm:$0xff] }
  0xba   :  { %511 = vmatmul.f32.gmra.mxu0 %v415_v14  ;;  %765 = vmatpush.msra.mxu2 %v720_v30 }
  0xbc   :  { %766 = vmatpush.msra.mxu2 %v719_v12 }
  0xbf   :  { %v568_v13 = vpop.f32.mrf.mxu1 }
  0xc1   :  { %538 = vmatmul.f32.gmra.mxu3 %v424_v8 }
  0xc7   :  { %v571_v61 = vpop.f32.mrf.mxu1 }
  0xcf   :  { %v574_v25 = vpop.f32.mrf.mxu1 }
  0xd7   :  { %v1520_v22 = vpop.f32.mrf.mxu1 }
  0xdf   :  { %v580_v0 = vpop.f32.mrf.mxu1 }
  0xe7   :  { %v583_v36 = vpop.f32.mrf.mxu1 }
  0xef   :  { %v586_v37 = vpop.f32.mrf.mxu1 }
 0x105   :  { %v494_v5 = vpop.f32.mrf.mxu0 }
 0x106   :  { %v560_v43 = vadd.f32 %v559_v34, %v494_v5 }
 0x108   :  { %v610_v52 = vadd.f32 %v1531_v44, %v560_v43 }
 0x10a   :  { %v627_v62 = vsel %vm626_vm7, %v610_v52, -inf }
 0x10c   :  { %v515_v21 = vpop.f32.mrf.mxu2  ;;  %v518_v26 = vpop.f32.mrf.mxu3 }
 0x10d   :  { %v584_v51 = vadd.f32 %v583_v36, %v518_v26 }
 0x10f   :  { %v497_v2 = vpop.f32.mrf.mxu0  ;;  %v618_v60 = vadd.f32 %v1531_v44, %v584_v51 }
 0x110   :  { %v563_v33 = vadd.f32 %v562_v6, %v497_v2 }
 0x111   :  { %v663_v16 = vsel %vm626_vm7, %v618_v60, -inf }
 0x112   :  { %v611_v41 = vadd.f32 %v1525_v32, %v563_v33 }
 0x114   :  { %v521_v11 = vpop.f32.mrf.mxu3  ;;  %v589_v27 = vpop.f32.mrf.mxu2  ;;  %v628_v31 = vsel %vm626_vm7, %v611_v41, -inf }
 0x115   :  { %v587_v1 = vadd.f32 %v586_v37, %v521_v11  ;;  %v629_v46 = vmax.f32 %v627_v62, %v628_v31 }
 0x117   :  { %v500_v35 = vpop.f32.mrf.mxu0  ;;  %v619_v49 = vadd.f32 %v1525_v32, %v587_v1  ;;  %v630_v24 = vrot.slane %v629_v46, 4 }
 0x118   :  { %v566_v18 = vadd.f32 %v565_v17, %v500_v35  ;;  %v581_v17 = vadd.f32 %v580_v0, %v515_v21  ;;  %v717_v21 = vld [vmem:[%s1597_s3 + $0x8] sm:$0xff] }
 0x119   :  { %v664_v55 = vsel %vm626_vm7, %v619_v49, -inf  ;;  %v631_v35 = vmax.f32 %v629_v46, %v630_v24  ;;  %v1582_v46 = vld [vmem:[%s1596_s2 + $0x10] sm:$0x3]  ;;  %s997_s2 = smov [#allocation2]  }
 0x11a   :  { %v612_v45 = vadd.f32 %v1531_v44, %v566_v18  ;;  %v665_v19 = vmax.f32 %v663_v16, %v664_v55  ;;  %s780_s11 = sshll.u32 %s997_s2, 4  ;;  %s781_s11 = int_to_ptr.vmem [resolvable:$true] %s780_s11 }
 0x11b   :  { %v632_v1 = vrot.slane %v631_v35, 2 }
 0x11c   :  { %v524_v54 = vpop.f32.mrf.mxu3  ;;  %v592_v63 = vpop.f32.mrf.mxu2  ;;  %v636_v7 = vsel %vm626_vm7, %v612_v45, -inf }
 0x11d   :  { %v590_v56 = vadd.f32 %v589_v27, %v524_v54  ;;  %v718_v54 = vld [vmem:[%s1597_s3 + $0x10] sm:$0xff] }
 0x11e   :  { %767 = vmatpush.msra.mxu2 %v718_v54 }
 0x11f   :  { %v503_v4 = vpop.f32.mrf.mxu0  ;;  %v620_v10 = vadd.f32 %v1531_v44, %v590_v56  ;;  %v633_v56 = vmax.f32 %v631_v35, %v632_v1 }
 0x120   :  { %v569_v40 = vadd.f32 %v568_v13, %v503_v4  ;;  %768 = vmatpush.msra.mxu2 %v717_v21 }
 0x121   :  { %v672_v6 = vsel %vm626_vm7, %v620_v10, -inf  ;;  %v634_v10 = vrot.slane %v633_v56, 1 }
 0x122   :  { %v613_v39 = vadd.f32 %v1525_v32, %v569_v40  ;;  %v617_v40 = vadd.f32 %v1525_v32, %v581_v17 }
 0x124   :  { %v527_v57 = vpop.f32.mrf.mxu3  ;;  %v595_v3 = vpop.f32.mrf.mxu2  ;;  %v637_v38 = vsel %vm626_vm7, %v613_v39, -inf  ;;  %v716_v39 = vld [vmem:[%s1597_s3] sm:$0xff] }
 0x125   :  { %v593_v15 = vadd.f32 %v592_v63, %v527_v57  ;;  %v638_v50 = vmax.f32 %v636_v7, %v637_v38  ;;  %769 = vmatpush.msra.mxu2 %v716_v39 }
 0x127   :  { %v506_v47 = vpop.f32.mrf.mxu0  ;;  %v621_v28 = vadd.f32 %v1525_v32, %v593_v15  ;;  %v639_v42 = vrot.slane %v638_v50, 4 }
 0x128   :  { %v572_v29 = vadd.f32 %v571_v61, %v506_v47 }
 0x129   :  { %v673_v14 = vsel %vm626_vm7, %v621_v28, -inf  ;;  %v640_v8 = vmax.f32 %v638_v50, %v639_v42 }
 0x12a   :  { %v614_v23 = vadd.f32 %v1531_v44, %v572_v29  ;;  %v674_v13 = vmax.f32 %v672_v6, %v673_v14  ;;  %v635_v6 = vmax.f32 %v633_v56, %v634_v10 }
 0x12b   :  { %v641_v36 = vrot.slane %v640_v8, 2 }
 0x12c   :  { %v530_v59 = vpop.f32.mrf.mxu3  ;;  %v598_v9 = vpop.f32.mrf.mxu2  ;;  %v645_v61 = vsel %vm626_vm7, %v614_v23, -inf  ;;  %v675_v18 = vrot.slane %v674_v13, 4 }
 0x12d   :  { %v596_v58 = vadd.f32 %v595_v3, %v530_v59  ;;  %v642_v41 = vmax.f32 %v640_v8, %v641_v36 }
 0x12e   :  { %v676_v51 = vmax.f32 %v674_v13, %v675_v18 }
 0x12f   :  { %v509_v20 = vpop.f32.mrf.mxu0  ;;  %v622_v2 = vadd.f32 %v1531_v44, %v596_v58  ;;  %v643_v60 = vrot.slane %v642_v41, 1 }
 0x130   :  { %v575_v53 = vadd.f32 %v574_v25, %v509_v20  ;;  %v666_v25 = vrot.slane %v665_v19, 4  ;;  %v677_v28 = vrot.slane %v676_v51, 2 }
 0x131   :  { %v681_v3 = vsel %vm626_vm7, %v622_v2, -inf  ;;  %v644_v20 = vmax.f32 %v642_v41, %v643_v60 }
 0x132   :  { %v615_v34 = vadd.f32 %v1525_v32, %v575_v53  ;;  %v667_v57 = vmax.f32 %v665_v19, %v666_v25  ;;  %v699_v53 = vperm.slane %v1582_v46, 0  ;;  %v678_v19 = vmax.f32 %v676_v51, %v677_v28 }
 0x134   :  { %v646_v5 = vsel %vm626_vm7, %v615_v34, -inf  ;;  %v533_v26 = vpop.f32.mrf.mxu3  ;;  %v601_v37 = vpop.f32.mrf.mxu2  ;;  %v668_v49 = vrot.slane %v667_v57, 2  ;;  %v701_v17 = vadd.f32 %v699_v53, %v644_v20  ;;  %v679_v25 = vrot.slane %v678_v19, 1 }
 0x135   :  { %v647_v11 = vmax.f32 %v645_v61, %v646_v5  ;;  %v599_v27 = vadd.f32 %v598_v9, %v533_v26  ;;  %v700_v21 = vadd.f32 %v699_v53, %v635_v6 }
 0x136   :  { %v669_v55 = vmax.f32 %v667_v57, %v668_v49  ;;  %v709_v36 = vmax.f32 %v701_v17, 0.0 }
 0x137   :  { %v648_v0 = vrot.slane %v647_v11, 4  ;;  %v623_v63 = vadd.f32 %v1525_v32, %v599_v27  ;;  %v512_v4 = vpop.f32.mrf.mxu0 }
 0x138   :  { %v578_v33 = vadd.f32 %v1520_v22, %v512_v4  ;;  %v655_v22 = vsel %vm626_vm7, %v617_v40, -inf  ;;  %v670_v58 = vrot.slane %v669_v55, 1  ;;  %v680_v4 = vmax.f32 %v678_v19, %v679_v25 }
 0x139   :  { %v649_v43 = vmax.f32 %v647_v11, %v648_v0  ;;  %v682_v45 = vsel %vm626_vm7, %v623_v63, -inf }
 0x13a   :  { %v683_v38 = vmax.f32 %v681_v3, %v682_v45  ;;  %v616_v47 = vadd.f32 %v1531_v44, %v578_v33  ;;  %v671_v2 = vmax.f32 %v669_v55, %v670_v58 }
 0x13b   :  { %v650_v48 = vrot.slane %v649_v43, 2 }
 0x13c   :  { %v684_v52 = vrot.slane %v683_v38, 4  ;;  %v654_v7 = vsel %vm626_vm7, %v616_v47, -inf  ;;  %v536_v15 = vpop.f32.mrf.mxu3  ;;  %v604_v30 = vpop.f32.mrf.mxu2  ;;  %v704_v18 = vadd.f32 %v699_v53, %v671_v2 }
 0x13d   :  { %v651_v50 = vmax.f32 %v649_v43, %v650_v48  ;;  %v656_v31 = vmax.f32 %v654_v7, %v655_v22  ;;  %v602_v9 = vadd.f32 %v601_v37, %v536_v15  ;;  %v731_v37 = vrot.slane %v709_v36, 7 }
 0x13e   :  { %v685_v59 = vmax.f32 %v683_v38, %v684_v52  ;;  %v705_v43 = vadd.f32 %v699_v53, %v680_v4  ;;  %v712_v41 = vmax.f32 %v704_v18, 0.0 }
 0x13f   :  { %v652_v29 = vrot.slane %v651_v50, 1  ;;  %v657_v62 = vrot.slane %v656_v31, 4  ;;  %v624_v8 = vadd.f32 %v1531_v44, %v602_v9  ;;  %v722_v9 = vperm.slane %v1582_v46, 1 }
 0x140   :  { %v686_v16 = vrot.slane %v685_v59, 2  ;;  %v713_v51 = vmax.f32 %v705_v43, 0.0  ;;  %v740_v15 = vrot.slane %v712_v41, 4 }
 0x141   :  { %v658_v42 = vmax.f32 %v656_v31, %v657_v62  ;;  %v653_v12 = vmax.f32 %v651_v50, %v652_v29  ;;  %v690_v27 = vsel %vm626_vm7, %v624_v8, -inf }
 0x142   :  { %v687_v61 = vmax.f32 %v685_v59, %v686_v16  ;;  %v743_v56 = vrot.slane %v713_v51, 3 }
 0x143   :  { %v659_v23 = vrot.slane %v658_v42, 2  ;;  %v702_v13 = vadd.f32 %v699_v53, %v653_v12 }
 0x144   :  { %v539_v14 = vpop.f32.mrf.mxu3  ;;  %v688_v44 = vrot.slane %v687_v61, 1 }
 0x145   :  { %v660_v24 = vmax.f32 %v658_v42, %v659_v23  ;;  %v605_v34 = vadd.f32 %v604_v30, %v539_v14  ;;  %v710_v0 = vmax.f32 %v702_v13, 0.0 }
 0x146   :  { %v689_v3 = vmax.f32 %v687_v61, %v688_v44 }
 0x147   :  { %v661_v5 = vrot.slane %v660_v24, 1  ;;  %v625_v26 = vadd.f32 %v1525_v32, %v605_v34  ;;  %v708_v32 = vmax.f32 %v700_v21, 0.0  ;;  %v734_v57 = vrot.slane %v710_v0, 6 }
 0x148   :  { %v706_v48 = vadd.f32 %v699_v53, %v689_v3 }
 0x149   :  { %v662_v11 = vmax.f32 %v660_v24, %v661_v5  ;;  %v691_v35 = vsel %vm626_vm7, %v625_v26, -inf  ;;  %v733_v38 = vsel %vm732_vm8, %v731_v37, %v708_v32 }
 0x14a   :  { %v692_v54 = vmax.f32 %v690_v27, %v691_v35  ;;  %v736_v22 = vsel %vm735_vm9, %v734_v57, %v733_v38  ;;  %v714_v50 = vmax.f32 %v706_v48, 0.0 }
 0x14b   :  { %v703_v63 = vadd.f32 %v699_v53, %v662_v11 }
 0x14c   :  { %v693_v40 = vrot.slane %v692_v54, 4  ;;  %v746_v62 = vrot.slane %v714_v50, 2 }
 0x14d   :  { %v711_v33 = vmax.f32 %v703_v63, 0.0 }
 0x14e   :  { %v694_v39 = vmax.f32 %v692_v54, %v693_v40 }
 0x14f   :  { %v737_v45 = vrot.slane %v711_v33, 5 }
 0x150   :  { %v695_v1 = vrot.slane %v694_v39, 2 }
 0x151   :  { %v739_v7 = vsel %vm738_vm10, %v737_v45, %v736_v22 }
 0x152   :  { %v696_v47 = vmax.f32 %v694_v39, %v695_v1  ;;  %v742_v31 = vsel %vm741_vm11, %v740_v15, %v739_v7 }
 0x153   :  { %v745_v59 = vsel %vm744_vm12, %v743_v56, %v742_v31 }
 0x154   :  { %v697_v52 = vrot.slane %v696_v47, 1  ;;  %v748_v55 = vsel %vm747_vm13, %v746_v62, %v745_v59 }
 0x156   :  { %v698_v49 = vmax.f32 %v696_v47, %v697_v52 }
 0x158   :  { %v707_v60 = vadd.f32 %v699_v53, %v698_v49 }
 0x15a   :  { %v715_v29 = vmax.f32 %v707_v60, 0.0 }
 0x15c   :  { %v749_v28 = vrot.slane %v715_v29, 1 }
 0x15e   :  { %v751_v42 = vsel %vm750_vm14, %v749_v28, %v748_v55 }
 0x15f   :  { %807 = vmatmul.msk.f32.vlgmr.msra.gmra.mxu2 %vm626_vm7, %v751_v42 }
 0x1e2   :  { %v771_v10 = vpop.f32.mrf.mxu2 }
 0x1e3   :  { %v772_v20 = vadd.f32 %v771_v10, %v722_v9 }
 0x1e5   :  { %774 = vst [vmem:[#allocation2] sm:$0xff] %v772_v20 }
 0x1e6   :  { %785 = dma.vmem_to_hbm [thread:$0]  %s781_s11, 128, %s783_s29, [#allocation3]  }
 0x1e7   :  { %992 = dma.done.wait [#allocation3], 128  }
 0x1e8   :  { %993 = vsyncadd [#allocation3], 4294967168 }
 0x1e9   :  { %790 = vsyncpa [#allocation3], 1 }

</bundles_post_ra>
